<compile_context>
chip_gen: v7x
topology: tpu7x:2x2x1
jax: 0.10.0
libtpu: 0.0.40
codegen_flags: <defaults>
</compile_context>

<pallas_src>
import functools

import jax
import jax.numpy as jnp
from jax.experimental import pallas as pl
from jax.experimental.pallas import tpu as pltpu


def mlp_kernel(x_ref, w1_ref, b1_ref, w2_ref, b2_ref, y_ref, z_ref, *, apply_relu):
    x = x_ref[...]
    z = jnp.dot(x, w1_ref[...], preferred_element_type=jnp.float32) + b1_ref[...]
    h = jnp.maximum(z, 0.0) if apply_relu else z          # static branch (traced once)
    y = jnp.dot(h.astype(w2_ref.dtype), w2_ref[...],
                preferred_element_type=jnp.float32) + b2_ref[...]
    z_ref[...] = z.astype(z_ref.dtype)
    y_ref[...] = y.astype(y_ref.dtype)


def _pick_batch_tile(N, D_in, H, D_out, max_tile=512,
                     budget_bytes=24 * 1024 * 1024):
    """Largest batch tile (<= max_tile, multiple of 8) whose double-buffered
    activation streams plus resident weights fit a VMEM budget that is safe
    even on v7x's 32 MiB scoped default."""
    if N <= max_tile:
        # Single block: block_shape equals full array dims, no (8,128) issue.
        return N
    resident = (D_in * H + H + H * D_out + D_out) * 4
    tn = max_tile
    while tn > 8:
        per_tile = (D_in + H + D_out) * 4 * tn * 2   # 2x for double buffering
        if resident + per_tile <= budget_bytes:
            break
        tn //= 2
    return max(8, (tn // 8) * 8)


def mlp_forward(x, w1, b1, w2, b2, nb_relu_dim=-1):
    """Pallas equivalent of Model.forward: returns (y, h, z)."""
    N, D_in = x.shape
    H = w1.shape[1]
    D_out = w2.shape[1]

    apply_relu = (nb_relu_dim == -1) or (nb_relu_dim == H)
    if not apply_relu and nb_relu_dim != 0:
        # TODO(synk): the partial-relu branch in the reference calls torch.cat
        # with invalid arguments (buggy as written); not reproduced.
        raise NotImplementedError("partial-relu branch not supported")

    b1 = b1.reshape(1, H)
    b2 = b2.reshape(1, D_out)

    tn = _pick_batch_tile(N, D_in, H, D_out)
    n_pad = ((N + tn - 1) // tn) * tn
    x_p = x if n_pad == N else jnp.pad(x, ((0, n_pad - N), (0, 0)))
    grid = (n_pad // tn,)

    flops = 2 * N * (D_in * H + H * D_out)
    bytes_accessed = 4 * (N * D_in + D_in * H + H + H * D_out + D_out
                          + N * D_out + N * H)

    kernel = functools.partial(mlp_kernel, apply_relu=apply_relu)

    y, z = pl.pallas_call(
        kernel,
        out_shape=(
            jax.ShapeDtypeStruct((n_pad, D_out), jnp.float32),
            jax.ShapeDtypeStruct((n_pad, H), jnp.float32),
        ),
        grid_spec=pltpu.PrefetchScalarGridSpec(
            num_scalar_prefetch=0,
            grid=grid,
            in_specs=[
                pl.BlockSpec((tn, D_in), lambda i: (i, 0)),     # x: tiled over batch
                pl.BlockSpec((D_in, H), lambda i: (0, 0)),      # w1: resident
                pl.BlockSpec((1, H), lambda i: (0, 0)),         # b1: resident
                pl.BlockSpec((H, D_out), lambda i: (0, 0)),     # w2: resident
                pl.BlockSpec((1, D_out), lambda i: (0, 0)),     # b2: resident
            ],
            out_specs=[
                pl.BlockSpec((tn, D_out), lambda i: (i, 0)),    # y
                pl.BlockSpec((tn, H), lambda i: (i, 0)),        # z
            ],
        ),
        compiler_params=pltpu.CompilerParams(
            dimension_semantics=("parallel",),
        ),
        cost_estimate=pl.CostEstimate(
            flops=flops, transcendentals=0, bytes_accessed=bytes_accessed),
    )(x_p, w1, b1, w2, b2)

    if n_pad != N:
        y = y[:N]
        z = z[:N]

    # h is a cheap VPU recompute from z; not written back from the kernel.
    h = jnp.maximum(z, 0.0) if apply_relu else z
    return y, h, z


def _ref_forward(x, w1, b1, w2, b2, apply_relu=True):
    z = x @ w1 + b1.reshape(-1)
    h = jnp.maximum(z, 0.0) if apply_relu else z
    y = h @ w2 + b2.reshape(-1)
    return y, h, z


if __name__ == "__main__":
    key = jax.random.PRNGKey(0)
    kx, k1, k2, k3, k4, kx2 = jax.random.split(key, 6)

    # --- Small shapes consistent with Model(D_in, H, D_out) ---
    N, D_in, Hdim, D_out = 8, 32, 64, 16
    x = jax.random.normal(kx, (N, D_in), dtype=jnp.float32)
    bound1 = 1.0 / jnp.sqrt(D_in)
    bound2 = 1.0 / jnp.sqrt(Hdim)
    w1 = jax.random.uniform(k1, (D_in, Hdim), jnp.float32, -bound1, bound1)
    b1 = jax.random.uniform(k2, (1, Hdim), jnp.float32, -bound1, bound1)
    w2 = jax.random.uniform(k3, (Hdim, D_out), jnp.float32, -bound2, bound2)
    b2 = jax.random.uniform(k4, (1, D_out), jnp.float32, -bound2, bound2)

    y, h, z = mlp_forward(x, w1, b1, w2, b2, nb_relu_dim=-1)
    jax.block_until_ready((y, h, z))
    y_r, h_r, z_r = _ref_forward(x, w1, b1, w2, b2, apply_relu=True)
    assert jnp.allclose(z, z_r, atol=1e-5), "z mismatch"
    assert jnp.allclose(h, h_r, atol=1e-5), "h mismatch"
    assert jnp.allclose(y, y_r, atol=1e-5), "y mismatch"

    # nb_relu_dim == 0 path (no ReLU), now handled fully in-kernel.
    y0, h0, z0 = mlp_forward(x, w1, b1, w2, b2, nb_relu_dim=0)
    jax.block_until_ready((y0, h0, z0))
    y0_r, h0_r, z0_r = _ref_forward(x, w1, b1, w2, b2, apply_relu=False)
    assert jnp.allclose(z0, z0_r, atol=1e-5), "z (relu=0) mismatch"
    assert jnp.allclose(h0, h0_r, atol=1e-5), "h (relu=0) mismatch"
    assert jnp.allclose(y0, y0_r, atol=1e-5), "y (relu=0) mismatch"

    # --- Larger lane-dense shapes to exercise the batch-tiled / pipelined path ---
    Nb, Db_in, Hb, Db_out = 1024, 256, 512, 128
    xb = jax.random.normal(kx2, (Nb, Db_in), dtype=jnp.float32)
    kb1, kb2, kb3, kb4 = jax.random.split(jax.random.PRNGKey(1), 4)
    bb1 = 1.0 / jnp.sqrt(Db_in)
    bb2 = 1.0 / jnp.sqrt(Hb)
    w1b = jax.random.uniform(kb1, (Db_in, Hb), jnp.float32, -bb1, bb1)
    b1b = jax.random.uniform(kb2, (1, Hb), jnp.float32, -bb1, bb1)
    w2b = jax.random.uniform(kb3, (Hb, Db_out), jnp.float32, -bb2, bb2)
    b2b = jax.random.uniform(kb4, (1, Db_out), jnp.float32, -bb2, bb2)

    yb, hb, zb = mlp_forward(xb, w1b, b1b, w2b, b2b, nb_relu_dim=-1)
    jax.block_until_ready((yb, hb, zb))
    yb_r, hb_r, zb_r = _ref_forward(xb, w1b, b1b, w2b, b2b, apply_relu=True)
    assert jnp.allclose(zb, zb_r, atol=2e-3, rtol=2e-3), "tiled z mismatch"
    assert jnp.allclose(yb, yb_r, atol=2e-3, rtol=2e-3), "tiled y mismatch"

    print("KERNEL_OK")
</pallas_src>

<mosaic_0001>
module attributes {stable_mosaic.version = 11 : i64} {
  func.func @mlp_kernel(%arg0: i32, %arg1: memref<8x32xf32, #tpu.memory_space<vmem>>, %arg2: memref<32x64xf32, #tpu.memory_space<vmem>>, %arg3: memref<1x64xf32, #tpu.memory_space<vmem>>, %arg4: memref<64x16xf32, #tpu.memory_space<vmem>>, %arg5: memref<1x16xf32, #tpu.memory_space<vmem>>, %arg6: memref<8x16xf32, #tpu.memory_space<vmem>>, %arg7: memref<8x64xf32, #tpu.memory_space<vmem>>) attributes {dimension_semantics = [#tpu.dimension_semantics<parallel>], iteration_bounds = array<i64: 1>, scalar_prefetch = 0 : i64, scratch_operands = 0 : i64, tpu.core_type = #tpu.core_type<tc>, window_params = [{transform_indices = @transform_0, window_bounds = array<i64: 8, 32>}, {pipeline_mode = #tpu.pipeline_mode<synchronous>, transform_indices = @transform_1, window_bounds = array<i64: 32, 64>}, {pipeline_mode = #tpu.pipeline_mode<synchronous>, transform_indices = @transform_2, window_bounds = array<i64: 1, 64>}, {pipeline_mode = #tpu.pipeline_mode<synchronous>, transform_indices = @transform_3, window_bounds = array<i64: 64, 16>}, {pipeline_mode = #tpu.pipeline_mode<synchronous>, transform_indices = @transform_4, window_bounds = array<i64: 1, 16>}, {transform_indices = @transform_5, window_bounds = array<i64: 8, 16>}, {transform_indices = @transform_6, window_bounds = array<i64: 8, 64>}]} {
    %c0 = arith.constant 0 : index
    %c0_0 = arith.constant 0 : index
    %0 = vector.load %arg1[%c0, %c0_0] : memref<8x32xf32, #tpu.memory_space<vmem>>, vector<8x32xf32>
    %c0_1 = arith.constant 0 : index
    %c0_2 = arith.constant 0 : index
    %1 = vector.load %arg2[%c0_1, %c0_2] : memref<32x64xf32, #tpu.memory_space<vmem>>, vector<32x64xf32>
    %cst = arith.constant dense<0.000000e+00> : vector<8x64xf32>
    %2 = tpu.matmul %0, %1, %cst {dimension_numbers = #tpu.dot_dimension_numbers<[1], [0], [0], [1], [0, 0, 1, 1], [], []>} : vector<8x32xf32>, vector<32x64xf32>, vector<8x64xf32> -> vector<8x64xf32>
    %c0_3 = arith.constant 0 : index
    %c0_4 = arith.constant 0 : index
    %3 = vector.load %arg3[%c0_3, %c0_4] : memref<1x64xf32, #tpu.memory_space<vmem>>, vector<1x64xf32>
    %4 = vector.broadcast %3 : vector<1x64xf32> to vector<8x64xf32>
    %5 = arith.addf %2, %4 : vector<8x64xf32>
    %cst_5 = arith.constant 0.000000e+00 : f32
    %6 = vector.broadcast %cst_5 : f32 to vector<8x64xf32>
    %7 = arith.maximumf %5, %6 : vector<8x64xf32>
    %c0_6 = arith.constant 0 : index
    %c0_7 = arith.constant 0 : index
    %8 = vector.load %arg4[%c0_6, %c0_7] : memref<64x16xf32, #tpu.memory_space<vmem>>, vector<64x16xf32>
    %cst_8 = arith.constant dense<0.000000e+00> : vector<8x16xf32>
    %9 = tpu.matmul %7, %8, %cst_8 {dimension_numbers = #tpu.dot_dimension_numbers<[1], [0], [0], [1], [0, 0, 1, 1], [], []>} : vector<8x64xf32>, vector<64x16xf32>, vector<8x16xf32> -> vector<8x16xf32>
    %c0_9 = arith.constant 0 : index
    %c0_10 = arith.constant 0 : index
    %10 = vector.load %arg5[%c0_9, %c0_10] : memref<1x16xf32, #tpu.memory_space<vmem>>, vector<1x16xf32>
    %11 = vector.broadcast %10 : vector<1x16xf32> to vector<8x16xf32>
    %12 = arith.addf %9, %11 : vector<8x16xf32>
    %c0_11 = arith.constant 0 : index
    %c0_12 = arith.constant 0 : index
    %13 = vector.load %arg7[%c0_11, %c0_12] : memref<8x64xf32, #tpu.memory_space<vmem>>, vector<8x64xf32>
    tpu.vector_store %arg7[%c0_11, %c0_12], %5 {strides = array<i32>} : memref<8x64xf32, #tpu.memory_space<vmem>>, vector<8x64xf32>,
    %c0_13 = arith.constant 0 : index
    %c0_14 = arith.constant 0 : index
    %14 = vector.load %arg6[%c0_13, %c0_14] : memref<8x16xf32, #tpu.memory_space<vmem>>, vector<8x16xf32>
    tpu.vector_store %arg6[%c0_13, %c0_14], %12 {strides = array<i32>} : memref<8x16xf32, #tpu.memory_space<vmem>>, vector<8x16xf32>,
    return
  }
  func.func @transform_0(%arg0: i32) -> (i32, i32) {
    %c0_i32 = arith.constant 0 : i32
    %c0_i32_0 = arith.constant 0 : i32
    return %arg0, %c0_i32 : i32, i32
  }
  func.func @transform_1(%arg0: i32) -> (i32, i32) {
    %c0_i32 = arith.constant 0 : i32
    %c0_i32_0 = arith.constant 0 : i32
    %c0_i32_1 = arith.constant 0 : i32
    return %c0_i32, %c0_i32_0 : i32, i32
  }
  func.func @transform_2(%arg0: i32) -> (i32, i32) {
    %c0_i32 = arith.constant 0 : i32
    %c0_i32_0 = arith.constant 0 : i32
    %c0_i32_1 = arith.constant 0 : i32
    return %c0_i32, %c0_i32_0 : i32, i32
  }
  func.func @transform_3(%arg0: i32) -> (i32, i32) {
    %c0_i32 = arith.constant 0 : i32
    %c0_i32_0 = arith.constant 0 : i32
    %c0_i32_1 = arith.constant 0 : i32
    return %c0_i32, %c0_i32_0 : i32, i32
  }
  func.func @transform_4(%arg0: i32) -> (i32, i32) {
    %c0_i32 = arith.constant 0 : i32
    %c0_i32_0 = arith.constant 0 : i32
    %c0_i32_1 = arith.constant 0 : i32
    return %c0_i32, %c0_i32_0 : i32, i32
  }
  func.func @transform_5(%arg0: i32) -> (i32, i32) {
    %c0_i32 = arith.constant 0 : i32
    %c0_i32_0 = arith.constant 0 : i32
    return %arg0, %c0_i32 : i32, i32
  }
  func.func @transform_6(%arg0: i32) -> (i32, i32) {
    %c0_i32 = arith.constant 0 : i32
    %c0_i32_0 = arith.constant 0 : i32
    return %arg0, %c0_i32 : i32, i32
  }
}

</mosaic_0001>

<bundles_post_ra>
// kernel: tpu_custom_call.1
= control target key start
LH: loop header
LB: loop body
LE: loop exit
PB: predicated region body
PF: predicated region fallthrough
CT: control target
= control target key end

     0   :  { %12 = vsyncpa [#allocation3], 0  ;;  %v350_v3 = vmov 0.0|0.0   ;;  %vm351_vm0 = vmmov 0   ;;  %v352_v6 = vmov 0.0   ;;  %s459_s0 = inlined_call_operand.vmem [shape: f32[8,32], index: 0, kind: input, shape index: {}]   ;;  %s460_s1 = inlined_call_operand.vmem [shape: f32[32,64], index: 1, kind: input, shape index: {}]   ;;  %s461_s2 = inlined_call_operand.vmem [shape: f32[1,64], index: 2, kind: input, shape index: {}]   ;;  %s462_s3 = inlined_call_operand.vmem [shape: f32[64,16], index: 3, kind: input, shape index: {}]   ;;  %s463_s4 = inlined_call_operand.vmem [shape: f32[1,16], index: 4, kind: input, shape index: {}]   ;;  %s464_s5 = inlined_call_operand.hbm [shape: f32[8,16], index: 5, kind: output, shape index: {0}]   ;;  %s465_s6 = inlined_call_operand.hbm [shape: f32[8,64], index: 6, kind: output, shape index: {1}]  }
   0x1   :  { %v25_v0 = vld [vmem:[%s460_s1] sm:$0xff]  ;;  %v26_v1 = vld [vmem:[%s460_s1 + $0x8] sm:$0xff]  ;;  %v27_v2 = vld [vmem:[%s460_s1 + $0x10] sm:$0xff]  ;;  %279 = vmatprep.subr.bf16.mxu0 %v350_v3  ;;  %257 = vmatprep.mubr.msk.f32.mxu0 %vm351_vm0, %v352_v6 }
   0x2   :  { %v280_v4 = vpack.c.bf16 %v26_v1, %v25_v0  ;;  %v28_v5 = vld [vmem:[%s460_s1 + $0x18] sm:$0xff]  ;;  %v111_v7 = vld [vmem:[%s462_s3] sm:$0xff]  ;;  %285 = vmatprep.subr.bf16.mxu1 %v350_v3  ;;  %v112_v8 = vld [vmem:[%s462_s3 + $0x8] sm:$0xff]  ;;  %276 = vmatprep.mubr.msk.f32.mxu1 %vm351_vm0, %v352_v6 }
   0x3   :  { %v113_v9 = vld [vmem:[%s462_s3 + $0x10] sm:$0xff]  ;;  %v114_v10 = vld [vmem:[%s462_s3 + $0x18] sm:$0xff]  ;;  %v283_v11 = vpack.c.bf16 %v28_v5, %v27_v2  ;;  %v286_v12 = vpack.c.bf16 %v112_v8, %v111_v7 }
   0x4   :  { %281 = vmatpush3.bf16.msra.mxu0 %v280_v4 }
   0x5   :  { %282 = vmatprep.subr.bf16.mxu0 %v350_v3 }
   0x6   :  { %13 = vsyncpa [#allocation5], 0  ;;  %287 = vmatpush3.bf16.msra.mxu1 %v286_v12  ;;  %v289_v13 = vpack.c.bf16 %v114_v10, %v113_v9  ;;  %v115_v14 = vld [vmem:[%s462_s3 + $0x20] sm:$0xff]  ;;  %v116_v15 = vld [vmem:[%s462_s3 + $0x28] sm:$0xff]  ;;  %vm36_vm1 = vcmask 261120   ;;  %vm126_vm2 = vcmask 523264  }
   0x7   :  { %288 = vmatprep.subr.bf16.mxu1 %v350_v3  ;;  %v24_v16 = vld [vmem:[%s459_s0] sm:$0xff]  ;;  %v292_v17 = vpack.c.bf16 %v116_v15, %v115_v14  ;;  %v117_v18 = vld [vmem:[%s462_s3 + $0x30] sm:$0xff]  ;;  %v118_v19 = vld [vmem:[%s462_s3 + $0x38] sm:$0xff]  ;;  %s353_s0 = smov [#allocation4]  }
   0x8   :  { %284 = vmatpush3.bf16.msra.mxu0 %v283_v11  ;;  %v295_v20 = vpack.c.bf16 %v118_v19, %v117_v18  ;;  %v231_v21 = vld [vmem:[%s461_s2] ss:$0 sm:$0xff]  ;;  %s219_s24 = sshll.u32 %s353_s0, 4  ;;  %s220_s24 = int_to_ptr.vmem [resolvable:$true] %s219_s24 }
   0x9   :  { %s302_s25 = scalar_lea.vmem %s220_s24, 128  ;;  %p307_p1 = scmp.lt.s32.totalorder %s220_s24, %s220_s24 }
   0xa   :  { %290 = vmatpush3.bf16.msra.mxu1 %v289_v13  ;;  %p303_p0 = scmp.ne.s32.totalorder %s220_s24, %s302_s25  ;;  %p308_p2 = scmp.lt.s32.totalorder %s302_s25, %s302_s25 }
   0xb   :  { %258 = vmatmul.mubr.msk.f32.vlgmr.msra.gmra.mrb[0].mxu0 %vm36_vm1, %v24_v16  ;;  %291 = vmatprep.subr.bf16.mxu1 %v350_v3 }
   0xc   :  { %p309_p3 = por %p308_p2, %p307_p1 }
   0xe   :  { %293 = vmatpush3.bf16.msra.mxu1 %v292_v17  ;;  %p310_p4 = pnand %p309_p3, %p303_p0 }
   0xf   :  { %294 = vmatprep.subr.bf16.mxu1 %v350_v3 }
  0x12   :  { %296 = vmatpush3.bf16.msra.mxu1 %v295_v20 }
  0xde   :  { %v106_v22 = vpop.f32.mrb[0].mxu0 }
  0xdf   :  { %v107_v23 = vadd.f32 %v231_v21, %v106_v22  ;;  %v259_v24 = vpop.f32.mrb[1].mxu0 }
  0xe1   :  { %v110_v25 = vmax.f32 %v107_v23, 0.0  ;;  %200 = vst.msk [vmem:[#allocation4] sm:$0xff] %vm126_vm2, %v107_v23 }
  0xe3   :  { %277 = vmatmul.mubr.msk.f32.vlgmr.msra.gmra.mrb[0].mxu1 %vm126_vm2, %v110_v25 }
  0xe4   :  { %313 = shalt.err (!%p310_p4)
}
  0xe5   :  { %s314_s2 = scalar_lea.hbm %s465_s6, 128 }
  0xe6   :  { %p315_p5 = scmp.ne.s32.totalorder %s465_s6, %s314_s2  ;;  %p318_p6 = scmp.lt.u32.totalorder %s314_s2, %s465_s6 }
  0xe8   :  { %p320_p7 = pnand %p318_p6, %p315_p5 }
  0xea   :  { %323 = shalt.err (!%p320_p7)
}
  0xeb   :  { %222 = dma.vmem_to_hbm [thread:$0]  %s220_s24, 128, %s465_s6, [#allocation5]   ;;  %v233_v26 = vld [vmem:[%s463_s4] ss:$0 sm:$0xff]  ;;  %vm201_vm3 = vcmask 130048  }
  0xec   :  { %s354_s11 = smov [#allocation2]  }
  0xed   :  { %s209_s12 = sshll.u32 %s354_s11, 4  ;;  %s210_s12 = int_to_ptr.vmem [resolvable:$true] %s209_s12 }
  0xee   :  { %s324_s1 = scalar_lea.vmem %s210_s12, 128  ;;  %p329_p9 = scmp.lt.s32.totalorder %s210_s12, %s210_s12 }
  0xef   :  { %p325_p8 = scmp.ne.s32.totalorder %s210_s12, %s324_s1  ;;  %p330_p10 = scmp.lt.s32.totalorder %s324_s1, %s324_s1 }
  0xf1   :  { %p331_p11 = por %p330_p10, %p329_p9 }
  0xf3   :  { %p332_p12 = pnand %p331_p11, %p325_p8 }
 0x1b6   :  { %v196_v27 = vpop.f32.mrb[0].mxu1 }
 0x1b7   :  { %v197_v28 = vadd.f32 %v233_v26, %v196_v27  ;;  %v278_v29 = vpop.f32.mrb[1].mxu1 }
 0x1b9   :  { %202 = vst.msk [vmem:[#allocation2] sm:$0xff] %vm201_vm3, %v197_v28 }
 0x1ba   :  { %335 = shalt.err (!%p332_p12)
}
 0x1bb   :  { %s336_s14 = scalar_lea.hbm %s464_s5, 128 }
 0x1bc   :  { %p337_p13 = scmp.ne.s32.totalorder %s464_s5, %s336_s14  ;;  %p340_p0 = scmp.lt.u32.totalorder %s336_s14, %s464_s5 }
 0x1be   :  { %p342_p1 = pnand %p340_p0, %p337_p13 }
 0x1c0   :  { %345 = shalt.err (!%p342_p1)
}
 0x1c1   :  { %212 = dma.vmem_to_hbm [thread:$0]  %s210_s12, 128, %s464_s5, [#allocation3]  }
 0x1c2   :  { %346 = dma.done.wait [#allocation3], 128  }
 0x1c3   :  { %347 = vsyncadd [#allocation3], 4294967168 }
 0x1c4   :  { %348 = dma.done.wait [#allocation5], 128  }
 0x1c5   :  { %349 = vsyncadd [#allocation5], 4294967168 }
 0x1c6   :  { %229 = vsyncpa [#allocation3], 1 }
 0x1c7   :  { %230 = vsyncpa [#allocation5], 1 }

</bundles_post_ra>
